<compile_context>
chip_gen: v5e
topology: v5e:2x2
jax: 0.10.0
libtpu: 0.0.40
codegen_flags: <defaults>
</compile_context>

<pallas_src>
import functools

import jax
import jax.numpy as jnp
from jax.experimental import pallas as pl
from jax.experimental.pallas import tpu as pltpu


def _fused_leaky_relu_kernel(x_ref, b_ref, o_ref, *, negative_slope, scale):
    # x_ref: (1, tc, ts) tile; b_ref: (tc, 1) per-channel bias that broadcasts
    # across the lane/spatial axis.
    xb = x_ref[...] + b_ref[...]
    # Fold `scale` into both branches of the select.
    o_ref[...] = jnp.where(
        xb >= 0, xb * scale, xb * (negative_slope * scale)
    ).astype(o_ref.dtype)


def _choose_tiles(C, S, dtype_bytes, target_bytes=2 * 1024 * 1024):
    """Pick (tc, ts) obeying the (8, 128) tiling rule with ~target_bytes tiles."""
    # Channel (sublane) tile: multiple of 8 (also 16 for bf16) or full extent.
    tc = C if C <= 256 else 256
    # Spatial (lane) tile: multiple of 128 or full extent, sized so one x tile
    # is ~target_bytes. Mem-bound op: 1-4 MiB tiles reach ~85% of HBM roofline
    # while leaving headroom for double-buffered in+out on v7x's smaller VMEM.
    target_elems = max(1, target_bytes // dtype_bytes)
    ts = max(128, (target_elems // max(tc, 1)) // 128 * 128)
    if ts >= S:
        ts = S  # full extent is always a legal block dim
    return tc, ts


def fused_leaky_relu(x, bias, negative_slope=0.2, scale=2.0 ** 0.5):
    """Pallas fused_leaky_relu for inputs with the channel axis at dim 1.

    x:    (N, C, *spatial)   (e.g. NCHW)
    bias: (C,)
    returns: same shape and dtype as x.
    """
    if x.ndim < 3:
        raise ValueError("expected input of rank >= 3 with channels at dim 1")
    # TODO(synk): the PyTorch op's ndim==3 path broadcasts bias on the LAST
    # dim; only the channel-at-dim-1 (NCHW-style) layout is routed here.
    orig_shape = x.shape
    N, C = orig_shape[0], orig_shape[1]
    S = 1
    for d in orig_shape[2:]:
        S *= d

    x3 = x.reshape(N, C, S)
    b2 = bias.astype(x.dtype).reshape(C, 1)

    dtype_bytes = jnp.dtype(x.dtype).itemsize
    tc, ts = _choose_tiles(C, S, dtype_bytes)
    grid = (N, pl.cdiv(C, tc), pl.cdiv(S, ts))

    kernel = functools.partial(
        _fused_leaky_relu_kernel,
        negative_slope=negative_slope,
        scale=scale,
    )

    out3 = pl.pallas_call(
        kernel,
        out_shape=jax.ShapeDtypeStruct((N, C, S), x.dtype),
        grid_spec=pltpu.PrefetchScalarGridSpec(
            num_scalar_prefetch=0,
            grid=grid,
            in_specs=[
                # x tile: lane-dense (last dim multiple of 128 or full S).
                pl.BlockSpec((1, tc, ts), lambda n, c, s: (n, c, s)),
                # bias tile: indexed only by the channel axis -> stays resident
                # in VMEM across the whole inner spatial sweep, never tiled by N.
                pl.BlockSpec((tc, 1), lambda n, c, s: (c, 0)),
            ],
            out_specs=pl.BlockSpec((1, tc, ts), lambda n, c, s: (n, c, s)),
        ),
        compiler_params=pltpu.CompilerParams(
            # Pure elementwise map: every grid axis is independent, letting the
            # runtime shard programs across v7x's two TensorCores.
            dimension_semantics=("parallel", "parallel", "parallel"),
        ),
    )(x3, b2)

    return out3.reshape(orig_shape)


class FusedLeakyReLU:
    """JAX/Pallas equivalent of the PyTorch FusedLeakyReLU module."""

    def __init__(self, channel, bias=True, negative_slope=0.2, scale=2.0 ** 0.5):
        # PyTorch initializes the bias parameter to zeros.
        self.bias = jnp.zeros((channel,), jnp.float32) if bias else None
        self.negative_slope = negative_slope
        self.scale = scale

    def __call__(self, x):
        # TODO(synk): bias=None path fabricates a zero bias instead of a
        # bias-free kernel variant (correct, but one extra tiny VMEM stream).
        bias = self.bias if self.bias is not None else jnp.zeros(
            (x.shape[1],), x.dtype)
        return fused_leaky_relu(x, bias, self.negative_slope, self.scale)


def _reference(x, bias, negative_slope, scale):
    xb = x + bias.reshape(1, -1, 1, 1).astype(x.dtype)
    return jnp.where(xb >= 0, xb, xb * negative_slope) * scale


if __name__ == "__main__":
    key = jax.random.PRNGKey(0)
    kx, kb = jax.random.split(key)

    N, C, H, W = 2, 4, 16, 16
    x = jax.random.normal(kx, (N, C, H, W), jnp.float32)

    mod = FusedLeakyReLU(C)
    # Nonzero deterministic bias to exercise the broadcast.
    mod.bias = jax.random.normal(kb, (C,), jnp.float32) * 0.1

    out = mod(x)
    jax.block_until_ready(out)

    ref = _reference(x, mod.bias, mod.negative_slope, mod.scale)
    assert out.shape == (N, C, H, W)
    assert out.dtype == x.dtype
    assert jnp.allclose(out, ref, atol=1e-5, rtol=1e-5)

    print("KERNEL_OK")
</pallas_src>

<mosaic_0001>
module attributes {stable_mosaic.version = 11 : i64} {
  func.func @_fused_leaky_relu_kernel(%arg0: i32, %arg1: i32, %arg2: i32, %arg3: memref<1x4x256xf32, #tpu.memory_space<vmem>>, %arg4: memref<4x1xf32, #tpu.memory_space<vmem>>, %arg5: memref<1x4x256xf32, #tpu.memory_space<vmem>>) attributes {dimension_semantics = [#tpu.dimension_semantics<parallel>, #tpu.dimension_semantics<parallel>, #tpu.dimension_semantics<parallel>], iteration_bounds = array<i64: 2, 1, 1>, scalar_prefetch = 0 : i64, scratch_operands = 0 : i64, tpu.core_type = #tpu.core_type<tc>, window_params = [{transform_indices = @transform_0, window_bounds = array<i64: 1, 4, 256>}, {transform_indices = @transform_1, window_bounds = array<i64: 4, 1>}, {transform_indices = @transform_2, window_bounds = array<i64: 1, 4, 256>}]} {
    %c0 = arith.constant 0 : index
    %c0_0 = arith.constant 0 : index
    %c0_1 = arith.constant 0 : index
    %0 = vector.load %arg3[%c0, %c0_0, %c0_1] : memref<1x4x256xf32, #tpu.memory_space<vmem>>, vector<1x4x256xf32>
    %c0_2 = arith.constant 0 : index
    %c0_3 = arith.constant 0 : index
    %1 = vector.load %arg4[%c0_2, %c0_3] : memref<4x1xf32, #tpu.memory_space<vmem>>, vector<4x1xf32>
    %2 = vector.shape_cast %1 : vector<4x1xf32> to vector<1x4x1xf32>
    %3 = vector.broadcast %2 : vector<1x4x1xf32> to vector<1x4x256xf32>
    %4 = arith.addf %0, %3 : vector<1x4x256xf32>
    %cst = arith.constant 0.000000e+00 : f32
    %5 = vector.broadcast %cst : f32 to vector<1x4x256xf32>
    %6 = arith.cmpf oge, %4, %5 : vector<1x4x256xf32>
    %cst_4 = arith.constant 1.41421354 : f32
    %7 = vector.broadcast %cst_4 : f32 to vector<1x4x256xf32>
    %8 = arith.mulf %4, %7 : vector<1x4x256xf32>
    %cst_5 = arith.constant 0.282842726 : f32
    %9 = vector.broadcast %cst_5 : f32 to vector<1x4x256xf32>
    %10 = arith.mulf %4, %9 : vector<1x4x256xf32>
    %11 = arith.select %6, %8, %10 : vector<1x4x256xi1>, vector<1x4x256xf32>
    %c0_6 = arith.constant 0 : index
    %c0_7 = arith.constant 0 : index
    %c0_8 = arith.constant 0 : index
    %12 = vector.load %arg5[%c0_6, %c0_7, %c0_8] : memref<1x4x256xf32, #tpu.memory_space<vmem>>, vector<1x4x256xf32>
    tpu.vector_store %arg5[%c0_6, %c0_7, %c0_8], %11 {strides = array<i32>} : memref<1x4x256xf32, #tpu.memory_space<vmem>>, vector<1x4x256xf32>,
    return
  }
  func.func @transform_0(%arg0: i32, %arg1: i32, %arg2: i32) -> (i32, i32, i32) {
    %c0_i32 = arith.constant 0 : i32
    return %arg0, %arg1, %arg2 : i32, i32, i32
  }
  func.func @transform_1(%arg0: i32, %arg1: i32, %arg2: i32) -> (i32, i32) {
    %c0_i32 = arith.constant 0 : i32
    %c0_i32_0 = arith.constant 0 : i32
    return %arg1, %c0_i32 : i32, i32
  }
  func.func @transform_2(%arg0: i32, %arg1: i32, %arg2: i32) -> (i32, i32, i32) {
    %c0_i32 = arith.constant 0 : i32
    return %arg0, %arg1, %arg2 : i32, i32, i32
  }
}

</mosaic_0001>

<bundles_post_ra>
// kernel: tpu_custom_call.1
= control target key start
LH: loop header
LB: loop body
LE: loop exit
PB: predicated region body
PF: predicated region fallthrough
CT: control target
= control target key end

     0   :  { %7 = vsyncpa [#allocation3], 0  ;;  %s693_s0 = inlined_call_operand.hbm [shape: f32[2,4,256], index: 0, kind: input, shape index: {}]   ;;  %s694_s1 = inlined_call_operand.vmem [shape: f32[4,1], index: 1, kind: input, shape index: {}]   ;;  %s695_s2 = inlined_call_operand.hbm [shape: f32[2,4,256], index: 2, kind: output, shape index: {}]  }
   0x1   :  { %9 = vsyncpa [#allocation3 + $0x1], 0 }
   0x2   :  { %10 = vsyncpa [#allocation4], 0 }
   0x3   :  { %12 = vsyncpa [#allocation4 + $0x1], 0  ;;  %s570_s9 = smov 0   ;;  %s572_s10 = smov 0  }
   0x4   :  { %s574_s11 = smov 0   ;;  %s576_s12 = smov 0  }
   0x5   :  { %s578_s13 = smov 0   ;;  %s580_s14 = smov 0  }
   0x6 LB: > { %s356_s15 = sadd.s32 4294967295, %s551_s14   ;;  %s357_s16 = sadd.s32 4294967294, %s551_s14   ;;  %s551_s14 = sphi %s580_s14, %s18_s14   ;;  %s547_s13 = sphi %s578_s13, %s704_s13   ;;  %s543_s12 = sphi %s576_s12, %s703_s12   ;;  %s539_s11 = sphi %s574_s11, %s702_s11   ;;  %s535_s10 = sphi %s572_s10, %s701_s10   ;;  %s531_s9 = sphi %s570_s9, %s700_s9  }
   0x7   : > { %s37_s17 = sadd.s32 1, %s547_s13  ;;  %s48_s18 = sadd.s32 1, %s539_s11 }
   0x8   : > { %p39_p0 = scmp.ge.s32.totalorder %s37_s17, 2  ;;  %p55_p1 = scmp.ne.s32.totalorder %s539_s11, %s535_s10 }
   0x9   : > { %p56_p2 = scmp.eq.s32.totalorder %s551_s14, 0  ;;  %p61_p3 = scmp.ne.s32.totalorder %s535_s10, %s531_s9 }
   0xa   : > { %s706_s17 = smov (%p39_p0, %s37_s17), 0  ;;  %p62_p5 = scmp.eq.s32.totalorder %s356_s15, 0 }
   0xb   : > { %p611_p4 = por %p56_p2, %p55_p1  ;;  %s41_s20 = ssub.s32 %s547_s13, %s706_s17 }
   0xc   : > { %p115_p6 = scmp.eq.s32.totalorder %s356_s15, 1  ;;  %p46_p7 = scmp.eq.s32.totalorder %s41_s20, 0 }
   0xd   : > { %p617_p8 = por %p62_p5, %p61_p3  ;;  %p121_p10 = scmp.eq.s32.totalorder %s357_s16, 1 }
   0xe   : > { %p621_p9 = por %p115_p6, %p55_p1  ;;  %p360_p12 = scmp.ge.s32.totalorder %s551_s14, 2 }
   0xf   : > { %s626_s23 = scalar_select %p46_p7, %s539_s11, %s48_s18  }
  0x10   : > { %p628_p11 = por %p121_p10, %p61_p3  ;;  %p386_p13 = scmp.lt.s32.totalorder %s551_s14, 2 }
  0x11   : > { %s148_s25 = sand.u32 1, %s539_s11   ;;  %s372_s27 = sshll.u32 %s547_s13, 3 }
  0x12   : > { %s361_s26 = sshll.u32 %s148_s25, 3  ;;  %s161_s30 = scalar_lea.hbm %s693_s0, %s372_s27 }
  0x13   : > { %s152_s3 = scalar_lea.vmem [#allocation2], %s361_s26  ;;  %s163_s5 = sshll.u32 %s161_s30, 4  ;;  %s164_s5 = int_to_ptr.hbm [resolvable:$true] %s163_s5 }
  0x14   : > { %s165_s4 = sshll.u32 %s152_s3, 4  ;;  %p379_p0 = pnand %p386_p13, %p611_p4  ;;  %s166_s4 = int_to_ptr.vmem [resolvable:$true] %s165_s4 }
  0x15   : > { %p364_p1 = scmp.ge.s32.totalorder %s551_s14, 1  ;;  %p170_p2 = scmp.lt.s32.totalorder %s551_s14, 3 }
  0x16   : > { %s149_s6 = scalar_lea.sflag [#allocation3], %s148_s25 }
  0x17   : > { %381 = dma.hbm_to_vmem [thread:$0]  (!%p379_p0), %s164_s5, 128, %s166_s4, %s149_s6  }
  0x18   : > { %p171_p3 = pnand %p364_p1, %p170_p2 }
  0x19   : > { %s644_s7 = sand.u32 (!%p171_p3), 1, %s535_s10  }
  0x1a   : > { %174 = sbr.rel (%p171_p3) target bundleno = 159 (0x9f), region = 28  ;;  %s365_s8 = sshll.u32 (!%p171_p3), %s644_s7, 3 }
  0x1b   : > { %s177_s15 = scalar_lea.sflag (!%p171_p3), [#allocation3], %s644_s7  ;;  %s180_s16 = scalar_lea.vmem (!%p171_p3), [#allocation2], %s365_s8 }
  0x1f   : > { %522 = dma.done.wait (%p617_p8), %s177_s15, 128  }
  0x20   : > { %524 = vsyncadd (%p617_p8), %s177_s15, 4294967168  ;;  %v553_v0 = vmov 0   ;;  %v213_v1 = vld [vmem:[%s694_s1] sm:$0xf]  ;;  %v554_v2 = vmov 839922192  }
  0x21   : > { %438 = vset.pattern.permute.xlu0 %v553_v0  ;;  %v219_v3 = vunpack.c.l.s4 %v554_v2  ;;  %s373_s20 = sshll.u32 %s543_s12, 3  ;;  %v212_v6 = vld [vmem:[%s180_s16] sm:$0xff]  ;;  %s205_s27 = scalar_lea.vmem [#allocation5], %s365_s8 }
  0x22   : > { %216 = vperm.xlu0 %438, %v213_v1   ;;  %s245_s21 = scalar_lea.hbm %s695_s2, %s373_s20  ;;  %s247_s28 = sshll.u32 %s205_s27, 4  ;;  %s248_s28 = int_to_ptr.vmem [resolvable:$true] %s247_s28 }
  0x23   : > { %v220_v4 = vunpack.c.0.s8 %v219_v3  ;;  %s249_s29 = sshll.u32 %s245_s21, 4  ;;  %s230_s12 = scalar_lea.sflag [#allocation4], %s644_s7  ;;  %s250_s29 = int_to_ptr.hbm [resolvable:$true] %s249_s29 }
  0x24   : > { %s483_s30 = sshra.s32 %s250_s29, 4  ;;  %s489_s6 = scalar_lea.hbm %s695_s2, 16  ;;  %s484_s30 = int_to_ptr.hbm [resolvable:$true] %s483_s30 }
  0x25   : > { %s485_s3 = scalar_lea.hbm %s484_s30, 8  ;;  %p490_p7 = scmp.lt.s32.totalorder %s484_s30, %s695_s2 }
  0x26   : > { %p486_p4 = scmp.ne.s32.totalorder %s484_s30, %s485_s3  ;;  %p491_p8 = scmp.lt.s32.totalorder %s489_s6, %s485_s3 }
  0x28   : > { %p487_p5 = pnand %p486_p4, %p621_p9  ;;  %p492_p10 = por %p491_p8, %p490_p7 }
  0x2a   : > { %p488_p6 = pneg %p487_p5 }
  0x2c   : > { %p493_p13 = pnand %p492_p10, %p488_p6 }
  0x94   : > { %v217_v5 = vpop.permute.xlu0 %216 }
  0x95   : > { %v221_v7 = vperm.slane %v217_v5, %v220_v4 }
  0x97   : > { %v223_v8 = vadd.f32 %v221_v7, %v212_v6 }
  0x99   : > { %vm224_vm0 = vcmp.ge.f32.partialorder %v223_v8, 0.0  ;;  %v225_v9 = vmul.f32 1.4142135, %v223_v8  ;;  %v226_v10 = vmul.f32 0.28284273, %v223_v8 }
  0x9b   : > { %v227_v11 = vsel %vm224_vm0, %v225_v9, %v226_v10 }
  0x9c   : > { %228 = vst [vmem:[%s205_s27] sm:$0xff] %v227_v11 }
  0x9d   : > { %496 = shalt.err (!%p493_p13)
}
  0x9e   : > { %376 = dma.vmem_to_hbm [thread:$0]  (%p621_p9), %s248_s28, 128, %s250_s29, %s230_s12  }
  0x9f PF: > { %s261_s7 = sand.u32 1, %s531_s9   ;;  %p383_p0 = pnand %p360_p12, %p628_p11 }
  0xa0   : > { %s262_s16 = scalar_lea.sflag [#allocation4], %s261_s7 }
  0xa1   : > { %p384_p1 = pneg %p383_p0 }
  0xa3   : > { %526 = dma.done.wait (%p384_p1), %s262_s16, 128  }
  0xa4   : > { %528 = vsyncadd (%p384_p1), %s262_s16, 4294967168  ;;  %s18_s14 = sadd.s32 1, %s551_s14   ;;  %s700_s9 = smov %s535_s10 }
  0xa5   : > { %p15_p2 = scmp.ge.s32.totalorder %s18_s14, 4   ;;  %s701_s10 = smov %s539_s11 }
  0xa6   : > { %s702_s11 = smov %s626_s23  ;;  %s703_s12 = smov %s547_s13 }
  0xa7   : > { %s704_s13 = smov %s706_s17  ;;  %17 = sbr.rel (!%p15_p2) target bundleno = 6 (0x6), region = 76 }
  0xac   :  { %268 = vsyncpa [#allocation3], 1 }
  0xad   :  { %270 = vsyncpa [#allocation3 + $0x1], 1 }
  0xae   :  { %271 = vsyncpa [#allocation4], 1 }
  0xaf   :  { %273 = vsyncpa [#allocation4 + $0x1], 1 }

</bundles_post_ra>
